<compile_context>
chip_gen: v6e
topology: v6e:2x2x1
jax: 0.10.0
libtpu: 0.0.40
codegen_flags: <defaults>
</compile_context>

<pallas_src>
import jax
import jax.numpy as jnp
from jax.experimental import pallas as pl
from jax.experimental.pallas import tpu as pltpu


def _mean_pool_kernel(h_ref, m_ref, o_ref, acc_ref, cnt_ref):
    # h_ref:   (BB, BS, H) hidden-state tile (input dtype, e.g. f32 / bf16)
    # m_ref:   (BB, BS)    attention-mask tile
    # o_ref:   (BB, H)     output tile (f32)
    # acc_ref: (BB, H)     f32 running sum of masked embeddings
    # cnt_ref: (BB, 1)     f32 running token count
    s = pl.program_id(1)

    @pl.when(s == 0)
    def _init():
        acc_ref[...] = jnp.zeros_like(acc_ref)
        cnt_ref[...] = jnp.zeros_like(cnt_ref)

    m_f32 = m_ref[...].astype(jnp.float32)                   # (BB, BS)
    h = h_ref[...]                                           # (BB, BS, H)
    # Mask is exactly 0/1, so multiplying in the input dtype is exact; the
    # sequence reduction accumulates in f32.
    masked = h * m_f32.astype(h.dtype)[..., None]            # (BB, BS, H)
    acc_ref[...] += jnp.sum(masked.astype(jnp.float32), axis=1)
    cnt_ref[...] += jnp.sum(m_f32, axis=1, keepdims=True)

    @pl.when(s == pl.num_programs(1) - 1)
    def _finalize():
        denom = jnp.maximum(cnt_ref[...], 1e-9)              # torch.clamp(min=1e-9)
        o_ref[...] = (acc_ref[...] / denom).astype(o_ref.dtype)


def _round_up(x: int, m: int) -> int:
    return (x + m - 1) // m * m


def mean_pooling(last_hidden_state: jax.Array,
                 attention_mask: jax.Array,
                 *,
                 block_b: int = 8,
                 block_s: int | None = None) -> jax.Array:
    """Masked mean pooling over the sequence axis (axis=1). Returns f32 (B, H)."""
    B, S, H = last_hidden_state.shape
    assert attention_mask.shape == (B, S)

    h_dtype = last_hidden_state.dtype
    itemsize = jnp.dtype(h_dtype).itemsize

    # ---- tile sizes -------------------------------------------------------
    bb = block_b                               # batch rows per block (sublane aligned)
    b_pad = _round_up(max(B, bb), bb)

    if block_s is None:
        # Keep one (bb, bs, H) input buffer around ~6 MiB so the double-buffered
        # pipeline fits even v7x's 64 MiB VMEM (32 MiB scoped) with headroom.
        budget_bytes = 6 * 1024 * 1024
        bs = budget_bytes // max(1, bb * H * itemsize)
        bs = max(128, (bs // 128) * 128)       # lane-dense mask block
        if _round_up(S, 8) <= bs:              # small S: one full-sequence tile
            bs = _round_up(S, 8)
    else:
        bs = block_s
    s_pad = _round_up(S, bs)

    # ---- zero-pad to tile multiples (zero mask rows contribute nothing) ----
    h = last_hidden_state
    m = attention_mask
    if (b_pad, s_pad) != (B, S):
        h = jnp.pad(h, ((0, b_pad - B), (0, s_pad - S), (0, 0)))
        m = jnp.pad(m, ((0, b_pad - B), (0, s_pad - S)))

    grid = (b_pad // bb, s_pad // bs)

    m_itemsize = jnp.dtype(m.dtype).itemsize
    cost = pl.CostEstimate(
        flops=2 * b_pad * s_pad * H,
        transcendentals=0,
        bytes_accessed=b_pad * s_pad * H * itemsize
        + b_pad * s_pad * m_itemsize
        + b_pad * H * 4,
    )

    out = pl.pallas_call(
        _mean_pool_kernel,
        out_shape=jax.ShapeDtypeStruct((b_pad, H), jnp.float32),
        grid_spec=pltpu.PrefetchScalarGridSpec(
            num_scalar_prefetch=0,
            grid=grid,
            in_specs=[
                # If DMA is still exposed at very high HBM BW (v7x), bump this
                # spec to pipeline_mode=pl.Buffered(3).
                pl.BlockSpec((bb, bs, H), lambda b, s: (b, s, 0)),
                pl.BlockSpec((bb, bs), lambda b, s: (b, s)),
            ],
            out_specs=pl.BlockSpec((bb, H), lambda b, s: (b, 0)),
            scratch_shapes=[
                pltpu.VMEM((bb, H), jnp.float32),   # embedding-sum accumulator
                pltpu.VMEM((bb, 1), jnp.float32),   # token-count accumulator
            ],
        ),
        compiler_params=pltpu.CompilerParams(
            dimension_semantics=("parallel", "arbitrary"),
            vmem_limit_bytes=32 * 1024 * 1024,
        ),
        cost_estimate=cost,
    )(h, m)

    return out[:B]


def mean_pooling_ref(last_hidden_state, attention_mask):
    """Pure-JAX reference mirroring the PyTorch forward."""
    m = attention_mask[..., None].astype(jnp.float32)
    sum_emb = jnp.sum(last_hidden_state.astype(jnp.float32) * m, axis=1)
    sum_mask = jnp.maximum(jnp.sum(m, axis=1), 1e-9)
    return sum_emb / sum_mask


if __name__ == "__main__":
    key = jax.random.PRNGKey(0)
    k1, k2, k3, k4 = jax.random.split(key, 4)

    # --- case 1: tiny f32 shapes implied by the module ---------------------
    B, S, H = 2, 8, 32
    hid = jax.random.normal(k1, (B, S, H), dtype=jnp.float32)
    msk = (jax.random.uniform(k2, (B, S)) > 0.3).astype(jnp.float32)

    out = jax.block_until_ready(mean_pooling(hid, msk))
    ref = mean_pooling_ref(hid, msk)
    assert out.shape == (B, H)
    assert jnp.allclose(out, ref, atol=1e-5, rtol=1e-5), "f32 mismatch vs reference"

    # --- case 2: bf16, multi-block batch + tiled sequence reduction --------
    B2, S2, H2 = 10, 300, 256
    hid2 = jax.random.normal(k3, (B2, S2, H2), dtype=jnp.bfloat16)
    msk2 = (jax.random.uniform(k4, (B2, S2)) > 0.3).astype(jnp.float32)

    out2 = jax.block_until_ready(mean_pooling(hid2, msk2, block_s=128))
    ref2 = mean_pooling_ref(hid2, msk2)
    assert out2.shape == (B2, H2)
    assert jnp.allclose(out2, ref2, atol=2e-3, rtol=2e-3), "bf16 mismatch vs reference"

    print("KERNEL_OK")
</pallas_src>

<mosaic_0001>
module attributes {stable_mosaic.version = 11 : i64} {
  func.func @_mean_pool_kernel(%arg0: i32, %arg1: i32, %arg2: memref<8x8x32xf32, #tpu.memory_space<vmem>>, %arg3: memref<8x8xf32, #tpu.memory_space<vmem>>, %arg4: memref<8x32xf32, #tpu.memory_space<vmem>>, %arg5: memref<8x32xf32, #tpu.memory_space<vmem>>, %arg6: memref<8x1xf32, #tpu.memory_space<vmem>>) attributes {dimension_semantics = [#tpu.dimension_semantics<parallel>, #tpu.dimension_semantics<arbitrary>], iteration_bounds = array<i64: 1, 1>, scalar_prefetch = 0 : i64, scratch_operands = 2 : i64, tpu.core_type = #tpu.core_type<tc>, window_params = [{transform_indices = @transform_0, window_bounds = array<i64: 8, 8, 32>}, {transform_indices = @transform_1, window_bounds = array<i64: 8, 8>}, {transform_indices = @transform_2, window_bounds = array<i64: 8, 32>}]} {
    %c0_i32 = arith.constant 0 : i32
    %0 = arith.cmpi eq, %arg1, %c0_i32 : i32
    %1 = arith.extui %0 : i1 to i32
    %c0_i32_0 = arith.constant 0 : i32
    %2 = arith.cmpi ne, %1, %c0_i32_0 : i32
    scf.if %2 {
      %cst_16 = arith.constant 0.000000e+00 : f32
      %20 = vector.broadcast %cst_16 : f32 to vector<8x32xf32>
      %c0_17 = arith.constant 0 : index
      %c0_18 = arith.constant 0 : index
      %21 = vector.load %arg5[%c0_17, %c0_18] : memref<8x32xf32, #tpu.memory_space<vmem>>, vector<8x32xf32>
      tpu.vector_store %arg5[%c0_17, %c0_18], %20 {strides = array<i32>} : memref<8x32xf32, #tpu.memory_space<vmem>>, vector<8x32xf32>,
      %cst_19 = arith.constant 0.000000e+00 : f32
      %22 = vector.broadcast %cst_19 : f32 to vector<8x1xf32>
      %c0_20 = arith.constant 0 : index
      %c0_21 = arith.constant 0 : index
      %23 = vector.load %arg6[%c0_20, %c0_21] : memref<8x1xf32, #tpu.memory_space<vmem>>, vector<8x1xf32>
      tpu.vector_store %arg6[%c0_20, %c0_21], %22 {strides = array<i32>} : memref<8x1xf32, #tpu.memory_space<vmem>>, vector<8x1xf32>,
    } else {
    }
    %c0 = arith.constant 0 : index
    %c0_1 = arith.constant 0 : index
    %3 = vector.load %arg3[%c0, %c0_1] : memref<8x8xf32, #tpu.memory_space<vmem>>, vector<8x8xf32>
    %c0_2 = arith.constant 0 : index
    %c0_3 = arith.constant 0 : index
    %c0_4 = arith.constant 0 : index
    %4 = vector.load %arg2[%c0_2, %c0_3, %c0_4] : memref<8x8x32xf32, #tpu.memory_space<vmem>>, vector<8x8x32xf32>
    %5 = vector.shape_cast %3 : vector<8x8xf32> to vector<8x8x1xf32>
    %6 = vector.broadcast %5 : vector<8x8x1xf32> to vector<8x8x32xf32>
    %7 = arith.mulf %4, %6 : vector<8x8x32xf32>
    %c0_5 = arith.constant 0 : index
    %c0_6 = arith.constant 0 : index
    %8 = vector.load %arg5[%c0_5, %c0_6] : memref<8x32xf32, #tpu.memory_space<vmem>>, vector<8x32xf32>
    %cst = arith.constant dense<0.000000e+00> : vector<8x32xf32>
    %9 = vector.multi_reduction <add>, %7, %cst [1] : vector<8x8x32xf32> to vector<8x32xf32>
    %10 = arith.addf %8, %9 : vector<8x32xf32>
    %c0_7 = arith.constant 0 : index
    %c0_8 = arith.constant 0 : index
    %11 = vector.load %arg5[%c0_7, %c0_8] : memref<8x32xf32, #tpu.memory_space<vmem>>, vector<8x32xf32>
    tpu.vector_store %arg5[%c0_7, %c0_8], %10 {strides = array<i32>} : memref<8x32xf32, #tpu.memory_space<vmem>>, vector<8x32xf32>,
    %c0_9 = arith.constant 0 : index
    %c0_10 = arith.constant 0 : index
    %12 = vector.load %arg6[%c0_9, %c0_10] : memref<8x1xf32, #tpu.memory_space<vmem>>, vector<8x1xf32>
    %cst_11 = arith.constant dense<0.000000e+00> : vector<8xf32>
    %13 = vector.multi_reduction <add>, %3, %cst_11 [1] : vector<8x8xf32> to vector<8xf32>
    %14 = vector.shape_cast %13 : vector<8xf32> to vector<8x1xf32>
    %15 = arith.addf %12, %14 : vector<8x1xf32>
    %c0_12 = arith.constant 0 : index
    %c0_13 = arith.constant 0 : index
    %16 = vector.load %arg6[%c0_12, %c0_13] : memref<8x1xf32, #tpu.memory_space<vmem>>, vector<8x1xf32>
    tpu.vector_store %arg6[%c0_12, %c0_13], %15 {strides = array<i32>} : memref<8x1xf32, #tpu.memory_space<vmem>>, vector<8x1xf32>,
    %c0_i32_14 = arith.constant 0 : i32
    %17 = arith.cmpi eq, %arg1, %c0_i32_14 : i32
    %18 = arith.extui %17 : i1 to i32
    %c0_i32_15 = arith.constant 0 : i32
    %19 = arith.cmpi ne, %18, %c0_i32_15 : i32
    scf.if %19 {
      %c0_16 = arith.constant 0 : index
      %c0_17 = arith.constant 0 : index
      %20 = vector.load %arg6[%c0_16, %c0_17] : memref<8x1xf32, #tpu.memory_space<vmem>>, vector<8x1xf32>
      %cst_18 = arith.constant 9.99999971E-10 : f32
      %21 = vector.broadcast %cst_18 : f32 to vector<8x1xf32>
      %22 = arith.maximumf %20, %21 : vector<8x1xf32>
      %c0_19 = arith.constant 0 : index
      %c0_20 = arith.constant 0 : index
      %23 = vector.load %arg5[%c0_19, %c0_20] : memref<8x32xf32, #tpu.memory_space<vmem>>, vector<8x32xf32>
      %24 = vector.broadcast %22 : vector<8x1xf32> to vector<8x32xf32>
      %25 = arith.divf %23, %24 : vector<8x32xf32>
      %c0_21 = arith.constant 0 : index
      %c0_22 = arith.constant 0 : index
      %26 = vector.load %arg4[%c0_21, %c0_22] : memref<8x32xf32, #tpu.memory_space<vmem>>, vector<8x32xf32>
      tpu.vector_store %arg4[%c0_21, %c0_22], %25 {strides = array<i32>} : memref<8x32xf32, #tpu.memory_space<vmem>>, vector<8x32xf32>,
    } else {
    }
    return
  }
  func.func @transform_0(%arg0: i32, %arg1: i32) -> (i32, i32, i32) {
    %c0_i32 = arith.constant 0 : i32
    %c0_i32_0 = arith.constant 0 : i32
    return %arg0, %arg1, %c0_i32 : i32, i32, i32
  }
  func.func @transform_1(%arg0: i32, %arg1: i32) -> (i32, i32) {
    %c0_i32 = arith.constant 0 : i32
    return %arg0, %arg1 : i32, i32
  }
  func.func @transform_2(%arg0: i32, %arg1: i32) -> (i32, i32) {
    %c0_i32 = arith.constant 0 : i32
    %c0_i32_0 = arith.constant 0 : i32
    return %arg0, %c0_i32 : i32, i32
  }
}

</mosaic_0001>

<bundles_post_ra>
// kernel: tpu_custom_call.1
= control target key start
LH: loop header
LB: loop body
LE: loop exit
PB: predicated region body
PF: predicated region fallthrough
CT: control target
= control target key end

     0   :  { %7 = vsyncpa [#allocation5], 0  ;;  %s360_s0 = inlined_call_operand.hbm [shape: f32[8,8,32], index: 0, kind: input, shape index: {}]   ;;  %s361_s1 = inlined_call_operand.hbm [shape: f32[8,8], index: 1, kind: input, shape index: {}]   ;;  %s362_s2 = inlined_call_operand.hbm [shape: f32[8,32], index: 2, kind: output, shape index: {}]  }
   0x1   :  { %8 = vsyncpa [#allocation8], 0 }
   0x2   :  { %9 = vsyncpa [#allocation6], 0  ;;  %s316_s9 = smov [#allocation4]  }
   0x3   :  { %s15_s10 = sshll.u32 %s316_s9, 4  ;;  %s16_s10 = int_to_ptr.vmem [resolvable:$true] %s15_s10 }
   0x4   :  { %s258_s11 = scalar_lea.vmem %s16_s10, 1024  ;;  %p263_p1 = scmp.lt.s32.totalorder %s16_s10, %s16_s10 }
   0x5   :  { %p259_p0 = scmp.ne.s32.totalorder %s16_s10, %s258_s11  ;;  %p264_p2 = scmp.lt.s32.totalorder %s258_s11, %s258_s11 }
   0x7   :  { %p265_p3 = por %p264_p2, %p263_p1 }
   0x9   :  { %p266_p4 = pnand %p265_p3, %p259_p0 }
   0xb   :  { %269 = shalt.err (!%p266_p4)
}
   0xc   :  { %s317_s12 = smov 128   ;;  %s318_s13 = smov 8  }
   0xd   :  { %21 = dma.hbm_to_vmem [thread:$0]  %s360_s0, 1024, %s16_s10, [#allocation5], %s317_s12, %s317_s12, %s318_s13  }
   0xe   :  { %s319_s16 = smov [#allocation7]  }
   0xf   :  { %s28_s17 = sshll.u32 %s319_s16, 4  ;;  %s29_s17 = int_to_ptr.vmem [resolvable:$true] %s28_s17 }
  0x10   :  { %s278_s18 = scalar_lea.vmem %s29_s17, 128  ;;  %p283_p6 = scmp.lt.s32.totalorder %s29_s17, %s29_s17 }
  0x11   :  { %p279_p5 = scmp.ne.s32.totalorder %s29_s17, %s278_s18  ;;  %p284_p7 = scmp.lt.s32.totalorder %s278_s18, %s278_s18 }
  0x13   :  { %p285_p8 = por %p284_p7, %p283_p6 }
  0x15   :  { %p286_p9 = pnand %p285_p8, %p279_p5 }
  0x17   :  { %289 = shalt.err (!%p286_p9)
}
  0x18   :  { %31 = dma.hbm_to_vmem [thread:$0]  %s361_s1, 128, %s29_s17, [#allocation8]  }
  0x19   :  { %310 = dma.done.wait [#allocation5], 1024  }
  0x1a   :  { %311 = vsyncadd [#allocation5], 4294966272 }
  0x1b   :  { %312 = dma.done.wait [#allocation8], 128  }
  0x1c   :  { %313 = vsyncadd [#allocation8], 4294967168  ;;  %v55_v0 = vlaneseq  ;;  %vm42_vm0 = vcmask 261120   ;;  %vm44_vm1 = vcmask 7168   ;;  %v320_v1 = vmov 0.0   ;;  %v46_v5 = vld [vmem:[#allocation7] sm:$0xff] }
  0x1d   :  { %43 = vst.msk [vmem:[#allocation2] sm:$0xff] %vm42_vm0, %v320_v1  ;;  %vm203_vm2 = vcmask 64512   ;;  %v321_v16 = vmov 0   ;;  %v48_v24 = vld [vmem:[#allocation4 + $0x8] sm:$0xff]  ;;  %v49_v26 = vld [vmem:[#allocation4 + $0x10] sm:$0xff]  ;;  %v50_v27 = vld [vmem:[#allocation4 + $0x18] sm:$0xff] }
  0x1e   :  { %v56_v2 = vshrl.u32 %v55_v0, 7  ;;  %45 = vst.msk [vmem:[#allocation3] sm:$0xff] %vm44_vm1, %v320_v1  ;;  %v204_v6 = vsel %vm203_vm2, %v46_v5, 0.0  ;;  %247 = vset.pattern.permute.xlu0 %v321_v16  ;;  %v51_v29 = vld [vmem:[#allocation4 + $0x20] sm:$0xff]  ;;  %v52_v34 = vld [vmem:[#allocation4 + $0x28] sm:$0xff]  ;;  %v53_v42 = vld [vmem:[#allocation4 + $0x30] sm:$0xff] }
  0x1f   :  { %205 = vadd.xlane.f32.xlu0 %v204_v6  ;;  %v54_v53 = vld [vmem:[#allocation4 + $0x38] sm:$0xff]  ;;  %v47_v58 = vld [vmem:[#allocation4] sm:$0xff]  ;;  %vm185_vm3 = vcmask 1041409   ;;  %vm187_vm4 = vcmask 1042434   ;;  %vm189_vm5 = vcmask 1043459   ;;  %vm191_vm6 = vcmask 1044484  }
  0x20   :  { %v64_v3 = vsub.s32 1, %v56_v2  ;;  %v71_v4 = vsub.s32 2, %v56_v2  ;;  %v78_v9 = vsub.s32 3, %v56_v2  ;;  %v85_v11 = vsub.s32 4, %v56_v2  ;;  %s322_s0 = smov [#allocation9]  }
  0x21   :  { %v92_v13 = vsub.s32 5, %v56_v2  ;;  %v99_v15 = vsub.s32 6, %v56_v2  ;;  %v57_v17 = vsub.s32 0, %v56_v2  ;;  %v106_v19 = vsub.s32 7, %v56_v2  ;;  %s230_s1 = sshll.u32 %s322_s0, 4  ;;  %s231_s1 = int_to_ptr.vmem [resolvable:$true] %s230_s1 }
  0x22   :  { %v65_v7 = vrot.slane %v46_v5, %v64_v3  ;;  %v72_v8 = vrot.slane %v46_v5, %v71_v4  ;;  %v79_v10 = vrot.slane %v46_v5, %v78_v9  ;;  %v86_v12 = vrot.slane %v46_v5, %v85_v11  ;;  %s290_s21 = scalar_lea.vmem %s231_s1, 128  ;;  %p295_p11 = scmp.lt.s32.totalorder %s231_s1, %s231_s1 }
  0x23   :  { %v93_v14 = vrot.slane %v46_v5, %v92_v13  ;;  %v100_v18 = vrot.slane %v46_v5, %v99_v15  ;;  %v58_v20 = vrot.slane %v46_v5, %v57_v17  ;;  %v107_v21 = vrot.slane %v46_v5, %v106_v19  ;;  %p291_p10 = scmp.ne.s32.totalorder %s231_s1, %s290_s21  ;;  %p296_p12 = scmp.lt.s32.totalorder %s290_s21, %s290_s21 }
  0x24   :  { %67 = vbcast.lane.b32.xlu1 %v65_v7, 256  ;;  %vm193_vm7 = vcmask 1045509   ;;  %vm195_vm8 = vcmask 1046534   ;;  %vm197_vm9 = vcmask 1047559  }
  0x25   :  { %v202_v45 = vld [vmem:[#allocation3] sm:$0xff]  ;;  %p297_p13 = por %p296_p12, %p295_p11 }
  0x27   :  { %p298_p0 = pnand %p297_p13, %p291_p10 }
  0x28   :  { %74 = vbcast.lane.b32.xlu1 %v72_v8, 256 }
  0x2c   :  { %81 = vbcast.lane.b32.xlu1 %v79_v10, 256 }
  0x30   :  { %88 = vbcast.lane.b32.xlu1 %v86_v12, 256 }
  0x34   :  { %95 = vbcast.lane.b32.xlu1 %v93_v14, 256 }
  0x35   :  { %60 = vbcast.lane.b32.xlu0 %v58_v20, 256 }
  0x38   :  { %102 = vbcast.lane.b32.xlu1 %v100_v18, 256 }
  0x3c   :  { %109 = vbcast.lane.b32.xlu1 %v107_v21, 256 }
  0x96   :  { %v68_v22 = vpop.permute.xlu1 %67 }
  0x97   :  { %v112_v28 = vmul.f32 %v68_v22, %v48_v24 }
  0x99   :  { %v128_v35 = vsel %vm42_vm0, %v112_v28, 0.0 }
  0x9a   :  { %v75_v23 = vpop.permute.xlu1 %74  ;;  %v129_v40 = vrot.slane %v128_v35, 4 }
  0x9b   :  { %v113_v30 = vmul.f32 %v75_v23, %v49_v26 }
  0x9c   :  { %v130_v51 = vadd.f32 %v129_v40, %v128_v35 }
  0x9d   :  { %v135_v36 = vsel %vm42_vm0, %v113_v30, 0.0 }
  0x9e   :  { %v82_v25 = vpop.permute.xlu1 %81  ;;  %v136_v43 = vrot.slane %v135_v36, 4  ;;  %v131_v63 = vrot.slane %v130_v51, 2 }
  0x9f   :  { %v114_v32 = vmul.f32 %v82_v25, %v50_v27 }
  0xa0   :  { %v137_v55 = vadd.f32 %v136_v43, %v135_v36  ;;  %v132_v10 = vadd.f32 %v131_v63, %v130_v51 }
  0xa1   :  { %v142_v38 = vsel %vm42_vm0, %v114_v32, 0.0 }
  0xa2   :  { %v89_v31 = vpop.permute.xlu1 %88  ;;  %v143_v46 = vrot.slane %v142_v38, 4  ;;  %v138_v2 = vrot.slane %v137_v55, 2  ;;  %v133_v22 = vrot.slane %v132_v10, 1 }
  0xa3   :  { %v115_v33 = vmul.f32 %v89_v31, %v51_v29 }
  0xa4   :  { %v144_v57 = vadd.f32 %v143_v46, %v142_v38  ;;  %v139_v14 = vadd.f32 %v138_v2, %v137_v55  ;;  %v134_v31 = vadd.f32 %v133_v22, %v132_v10 }
  0xa5   :  { %v149_v41 = vsel %vm42_vm0, %v115_v33, 0.0 }
  0xa6   :  { %v96_v37 = vpop.permute.xlu1 %95  ;;  %v150_v48 = vrot.slane %v149_v41, 4  ;;  %v145_v6 = vrot.slane %v144_v57, 2  ;;  %v140_v25 = vrot.slane %v139_v14, 1 }
  0xa7   :  { %v116_v39 = vmul.f32 %v96_v37, %v52_v34 }
  0xa8   :  { %v206_v50 = vpop.xlane.xlu0 %205  ;;  %v151_v61 = vadd.f32 %v150_v48, %v149_v41  ;;  %v146_v17 = vadd.f32 %v145_v6, %v144_v57  ;;  %v141_v34 = vadd.f32 %v140_v25, %v139_v14  ;;  %v119_v48 = vld [vmem:[#allocation2] sm:$0xff] }
  0xa9   :  { %v156_v44 = vsel %vm42_vm0, %v116_v39, 0.0  ;;  %v207_v54 = vadd.f32 %v206_v50, %v202_v45 }
  0xaa   :  { %v103_v47 = vpop.permute.xlu1 %102  ;;  %v157_v52 = vrot.slane %v156_v44, 4  ;;  %v152_v8 = vrot.slane %v151_v61, 2  ;;  %v147_v27 = vrot.slane %v146_v17, 1 }
  0xab   :  { %v117_v49 = vmul.f32 %v103_v47, %v53_v42  ;;  %209 = vst.msk [vmem:[#allocation3] sm:$0xff] %vm44_vm1, %v207_v54 }
  0xac   :  { %v158_v0 = vadd.f32 %v157_v52, %v156_v44  ;;  %v61_v1 = vpop.permute.xlu0 %60  ;;  %v153_v21 = vadd.f32 %v152_v8, %v151_v61  ;;  %v148_v36 = vadd.f32 %v147_v27, %v146_v17 }
  0xad   :  { %v163_v56 = vsel %vm42_vm0, %v117_v49, 0.0  ;;  %v111_v3 = vmul.f32 %v61_v1, %v47_v58 }
  0xae   :  { %v164_v59 = vrot.slane %v163_v56, 4  ;;  %v110_v60 = vpop.permute.xlu1 %109  ;;  %v159_v11 = vrot.slane %v158_v0, 2  ;;  %v154_v30 = vrot.slane %v153_v21, 1 }
  0xaf   :  { %v118_v62 = vmul.f32 %v110_v60, %v54_v53  ;;  %v121_v9 = vsel %vm42_vm0, %v111_v3, 0.0 }
  0xb0   :  { %v165_v4 = vadd.f32 %v164_v59, %v163_v56  ;;  %v122_v12 = vrot.slane %v121_v9, 4  ;;  %v160_v23 = vadd.f32 %v159_v11, %v158_v0  ;;  %v155_v39 = vadd.f32 %v154_v30, %v153_v21 }
  0xb1   :  { %v170_v5 = vsel %vm42_vm0, %v118_v62, 0.0 }
  0xb2   :  { %v171_v7 = vrot.slane %v170_v5, 4  ;;  %v166_v15 = vrot.slane %v165_v4, 2  ;;  %v213_v16 = vld [vmem:[#allocation3] sm:$0xff]  ;;  %v123_v18 = vadd.f32 %v122_v12, %v121_v9  ;;  %v161_v32 = vrot.slane %v160_v23, 1 }
  0xb3   :  { %v214_v20 = vmax.f32 %v213_v16, 1e-09 }
  0xb4   :  { %v172_v13 = vadd.f32 %v171_v7, %v170_v5  ;;  %v124_v24 = vrot.slane %v123_v18, 2  ;;  %v167_v26 = vadd.f32 %v166_v15, %v165_v4  ;;  %v162_v40 = vadd.f32 %v161_v32, %v160_v23 }
  0xb5   :  { %218 = vperm.xlu0 %247, %v214_v20  }
  0xb6   :  { %v173_v19 = vrot.slane %v172_v13, 2  ;;  %v125_v28 = vadd.f32 %v124_v24, %v123_v18  ;;  %v168_v35 = vrot.slane %v167_v26, 1 }
  0xb8   :  { %v174_v29 = vadd.f32 %v173_v19, %v172_v13  ;;  %v126_v33 = vrot.slane %v125_v28, 1  ;;  %v169_v43 = vadd.f32 %v168_v35, %v167_v26 }
  0xba   :  { %v127_v37 = vadd.f32 %v126_v33, %v125_v28  ;;  %v175_v38 = vrot.slane %v174_v29, 1 }
  0xbc   :  { %v186_v41 = vsel %vm185_vm3, %v134_v31, %v127_v37  ;;  %v176_v45 = vadd.f32 %v175_v38, %v174_v29 }
  0xbd   :  { %v188_v42 = vsel %vm187_vm4, %v141_v34, %v186_v41 }
  0xbe   :  { %v190_v44 = vsel %vm189_vm5, %v148_v36, %v188_v42 }
  0xbf   :  { %v192_v46 = vsel %vm191_vm6, %v155_v39, %v190_v44 }
  0xc0   :  { %v194_v47 = vsel %vm193_vm7, %v162_v40, %v192_v46 }
  0xc1   :  { %v196_v49 = vsel %vm195_vm8, %v169_v43, %v194_v47 }
  0xc2   :  { %v198_v50 = vsel %vm197_vm9, %v176_v45, %v196_v49 }
  0xc3   :  { %v200_v51 = vadd.f32 %v198_v50, %v119_v48 }
  0xc5   :  { %201 = vst.msk [vmem:[#allocation2] sm:$0xff] %vm42_vm0, %v200_v51 }
  0xcc   :  { %v215_v54 = vld [vmem:[#allocation2] sm:$0xff] }
 0x130   :  { %v219_v52 = vpop.permute.xlu0 %218 }
 0x131   :  { %248 = vrcp.f32 %v219_v52 }
 0x13e   :  { %v249_v53 = vpop.eup %248 }
 0x13f   :  { %v222_v55 = vmul.f32 %v249_v53, %v215_v54 }
 0x141   :  { %223 = vst.msk [vmem:[#allocation9] sm:$0xff] %vm42_vm0, %v222_v55 }
 0x142   :  { %301 = shalt.err (!%p298_p0)
}
 0x143   :  { %233 = dma.vmem_to_hbm [thread:$0]  %s231_s1, 128, %s362_s2, [#allocation6]  }
 0x144   :  { %314 = dma.done.wait [#allocation6], 128  }
 0x145   :  { %315 = vsyncadd [#allocation6], 4294967168 }
 0x146   :  { %237 = vsyncpa [#allocation5], 1 }
 0x147   :  { %238 = vsyncpa [#allocation8], 1 }
 0x148   :  { %239 = vsyncpa [#allocation6], 1 }

</bundles_post_ra>
